<compile_context>
chip_gen: v7x
topology: tpu7x:2x2x1
jax: 0.10.0
libtpu: 0.0.40
codegen_flags: <defaults>
</compile_context>

<pallas_src>
import jax
import jax.numpy as jnp
from jax import lax
from jax.experimental import pallas as pl
from jax.experimental.pallas import tpu as pltpu


def set_batch_norm_kernel(valid_ref, alive_ref, x_ref, w_ref, b_ref, o_ref):
    # valid_ref: (TB, 1, 1) f32   (clamped valid counts, precomputed in wrapper)
    # alive_ref: (TB, S, 1) f32   (1.0 = valid element, 0.0 = masked)
    # x_ref:     (TB, S, Fp)
    # w_ref/b_ref: (1, Fp)
    alive = alive_ref[...]                                   # (TB, S, 1)
    x = x_ref[...].astype(jnp.float32) * alive               # zero masked rows

    valid = valid_ref[...]                                   # (TB, 1, 1), >= 1
    batch_mask = valid > 1.0                                 # (TB, 1, 1) bool

    sum_x = jnp.sum(x, axis=1, keepdims=True)                # (TB, 1, Fp)
    mean = jnp.where(batch_mask, sum_x / valid, sum_x)

    # NOTE: matches PyTorch exactly — the squared-deviation sum runs over ALL S
    # positions (masked rows contribute (0 - mean)^2), divided by valid_counts.
    variance = jnp.sum((x - mean) ** 2, axis=1, keepdims=True) / valid
    variance = jnp.where(batch_mask, variance, jnp.zeros_like(variance))
    # std = where(batch_mask, sqrt(var + 1e-6), 1)  ->  use rsqrt (EUP) + multiply
    inv_std = jnp.where(batch_mask, lax.rsqrt(variance + 1e-6),
                        jnp.ones_like(variance))              # (TB, 1, Fp)

    # F.linear(normalized, diag_embed(w), b) == normalized * w + b, folded:
    w = w_ref[...].astype(jnp.float32)[:, None, :]            # (1, 1, Fp)
    b = b_ref[...].astype(jnp.float32)[:, None, :]            # (1, 1, Fp)
    scale = inv_std * w                                       # (TB, 1, Fp)
    shift = b - mean * scale                                  # (TB, 1, Fp)

    o_ref[...] = (x * scale + shift).astype(o_ref.dtype)


def _choose_tb(B, S, Fp, budget_elems=1 << 20):
    """Largest divisor of B whose x-block (TB*S*Fp f32) stays within budget and
    leaves at least 2 grid steps (so both v7x TensorCores get a slice)."""
    tb_cap = max(1, budget_elems // max(1, S * Fp))
    if B > 1:
        tb_cap = min(tb_cap, max(1, B // 2))
    tb = 1
    for d in range(1, min(B, tb_cap) + 1):
        if B % d == 0:
            tb = d
    return tb


def set_batch_norm(x, mask, weights, biases):
    """x: (B, S, F) float32, mask: (B, S) bool (True = masked / dead),
    weights, biases: (F,) float32. Returns (B, S, F) in x.dtype."""
    B, S, F = x.shape
    Fp = ((F + 127) // 128) * 128          # lane-dense feature dim

    alive = (~mask).astype(jnp.float32).reshape(B, S, 1)
    valid = jnp.maximum(jnp.sum(alive, axis=1, keepdims=True), 1.0)  # (B, 1, 1)

    if Fp != F:
        # Padding is layout plumbing: padded x columns are zero, padded weights
        # are 1 / biases 0, and the output is sliced back to F below.
        x_p = jnp.pad(x, ((0, 0), (0, 0), (0, Fp - F)))
        w_p = jnp.pad(weights, (0, Fp - F), constant_values=1.0)
        b_p = jnp.pad(biases, (0, Fp - F), constant_values=0.0)
    else:
        x_p, w_p, b_p = x, weights, biases
    w2 = w_p.reshape(1, Fp)
    b2 = b_p.reshape(1, Fp)

    TB = _choose_tb(B, S, Fp)

    out = pl.pallas_call(
        set_batch_norm_kernel,
        out_shape=jax.ShapeDtypeStruct((B, S, Fp), x.dtype),
        grid_spec=pltpu.PrefetchScalarGridSpec(
            num_scalar_prefetch=0,
            grid=(B // TB,),
            in_specs=[
                pl.BlockSpec((TB, 1, 1), lambda i: (i, 0, 0)),   # valid counts
                pl.BlockSpec((TB, S, 1), lambda i: (i, 0, 0)),   # alive mask
                pl.BlockSpec((TB, S, Fp), lambda i: (i, 0, 0)),  # x
                pl.BlockSpec((1, Fp), lambda i: (0, 0)),         # weights (diag)
                pl.BlockSpec((1, Fp), lambda i: (0, 0)),         # biases
            ],
            out_specs=pl.BlockSpec((TB, S, Fp), lambda i: (i, 0, 0)),
        ),
        compiler_params=pltpu.CompilerParams(
            dimension_semantics=("parallel",),
            vmem_limit_bytes=48 * 1024 * 1024,   # > scoped default, headroom on v7x
        ),
    )(valid, alive, x_p, w2, b2)

    return out[..., :F] if Fp != F else out


def set_batch_norm_ref(x, mask, weights, biases):
    """Pure-JAX reference mirroring the PyTorch forward."""
    alive = (~mask).astype(jnp.float32)[..., None]               # (B, S, 1)
    valid = jnp.maximum(alive.sum(axis=1, keepdims=True), 1.0)   # (B, 1, 1)
    batch_mask = valid > 1.0
    xm = x * alive
    sum_x = xm.sum(axis=1, keepdims=True)
    mean = jnp.where(batch_mask, sum_x / valid, sum_x)
    var = ((xm - mean) ** 2).sum(axis=1, keepdims=True) / valid
    var = jnp.where(batch_mask, var, jnp.zeros_like(sum_x))
    std = jnp.where(batch_mask, jnp.sqrt(var + 1e-6), jnp.ones_like(sum_x))
    normed = (xm - mean) / std
    return normed * weights + biases


if __name__ == "__main__":
    B, S, F = 2, 8, 32

    key = jax.random.PRNGKey(0)
    kx, km = jax.random.split(key)
    x = jax.random.normal(kx, (B, S, F), dtype=jnp.float32)
    mask = jax.random.bernoulli(km, 0.3, (B, S))     # True = masked-out element

    # Deterministic parameter init, per the module's __init__:
    weights = jnp.ones((F,), dtype=jnp.float32)      # constant_(1.0)
    biases = jnp.zeros((F,), dtype=jnp.float32)      # constant_(0.0)

    out = set_batch_norm(x, mask, weights, biases)
    out = jax.block_until_ready(out)

    ref = set_batch_norm_ref(x, mask, weights, biases)
    assert out.shape == (B, S, F)
    assert jnp.allclose(out, ref, atol=1e-4, rtol=1e-5)

    print("KERNEL_OK")
</pallas_src>

<mosaic_0001>
module attributes {stable_mosaic.version = 11 : i64} {
  func.func @set_batch_norm_kernel(%arg0: i32, %arg1: memref<1x1x1xf32, #tpu.memory_space<vmem>>, %arg2: memref<1x8x1xf32, #tpu.memory_space<vmem>>, %arg3: memref<1x8x128xf32, #tpu.memory_space<vmem>>, %arg4: memref<1x128xf32, #tpu.memory_space<vmem>>, %arg5: memref<1x128xf32, #tpu.memory_space<vmem>>, %arg6: memref<1x8x128xf32, #tpu.memory_space<vmem>>) attributes {dimension_semantics = [#tpu.dimension_semantics<parallel>], iteration_bounds = array<i64: 2>, scalar_prefetch = 0 : i64, scratch_operands = 0 : i64, tpu.core_type = #tpu.core_type<tc>, window_params = [{transform_indices = @transform_0, window_bounds = array<i64: 1, 1, 1>}, {transform_indices = @transform_1, window_bounds = array<i64: 1, 8, 1>}, {transform_indices = @transform_2, window_bounds = array<i64: 1, 8, 128>}, {pipeline_mode = #tpu.pipeline_mode<synchronous>, transform_indices = @transform_3, window_bounds = array<i64: 1, 128>}, {pipeline_mode = #tpu.pipeline_mode<synchronous>, transform_indices = @transform_4, window_bounds = array<i64: 1, 128>}, {transform_indices = @transform_5, window_bounds = array<i64: 1, 8, 128>}]} {
    %c0 = arith.constant 0 : index
    %c0_0 = arith.constant 0 : index
    %c0_1 = arith.constant 0 : index
    %0 = vector.load %arg2[%c0, %c0_0, %c0_1] : memref<1x8x1xf32, #tpu.memory_space<vmem>>, vector<1x8x1xf32>
    %c0_2 = arith.constant 0 : index
    %c0_3 = arith.constant 0 : index
    %c0_4 = arith.constant 0 : index
    %1 = vector.load %arg3[%c0_2, %c0_3, %c0_4] : memref<1x8x128xf32, #tpu.memory_space<vmem>>, vector<1x8x128xf32>
    %2 = vector.broadcast %0 : vector<1x8x1xf32> to vector<1x8x128xf32>
    %3 = arith.mulf %1, %2 : vector<1x8x128xf32>
    %c0_5 = arith.constant 0 : index
    %c0_6 = arith.constant 0 : index
    %c0_7 = arith.constant 0 : index
    %4 = vector.load %arg1[%c0_5, %c0_6, %c0_7] : memref<1x1x1xf32, #tpu.memory_space<vmem>>, vector<1x1x1xf32>
    %cst = arith.constant 1.000000e+00 : f32
    %5 = vector.broadcast %cst : f32 to vector<1x1x1xf32>
    %6 = arith.cmpf ogt, %4, %5 : vector<1x1x1xf32>
    %cst_8 = arith.constant dense<0.000000e+00> : vector<1x128xf32>
    %7 = vector.multi_reduction <add>, %3, %cst_8 [1] : vector<1x8x128xf32> to vector<1x128xf32>
    %8 = vector.shape_cast %7 : vector<1x128xf32> to vector<1x1x128xf32>
    %9 = vector.broadcast %4 : vector<1x1x1xf32> to vector<1x1x128xf32>
    %10 = arith.divf %8, %9 : vector<1x1x128xf32>
    %11 = vector.shape_cast %6 : vector<1x1x1xi1> to vector<1x1x1xi1>
    %12 = vector.broadcast %11 : vector<1x1x1xi1> to vector<1x1x128xi1>
    %13 = arith.select %12, %10, %8 : vector<1x1x128xi1>, vector<1x1x128xf32>
    %14 = vector.broadcast %13 : vector<1x1x128xf32> to vector<1x8x128xf32>
    %15 = arith.subf %3, %14 : vector<1x8x128xf32>
    %16 = arith.mulf %15, %15 : vector<1x8x128xf32>
    %cst_9 = arith.constant dense<0.000000e+00> : vector<1x128xf32>
    %17 = vector.multi_reduction <add>, %16, %cst_9 [1] : vector<1x8x128xf32> to vector<1x128xf32>
    %18 = vector.shape_cast %17 : vector<1x128xf32> to vector<1x1x128xf32>
    %19 = vector.broadcast %4 : vector<1x1x1xf32> to vector<1x1x128xf32>
    %20 = arith.divf %18, %19 : vector<1x1x128xf32>
    %cst_10 = arith.constant 0.000000e+00 : f32
    %21 = vector.broadcast %cst_10 : f32 to vector<1x1x128xf32>
    %22 = vector.shape_cast %6 : vector<1x1x1xi1> to vector<1x1x1xi1>
    %23 = vector.broadcast %22 : vector<1x1x1xi1> to vector<1x1x128xi1>
    %24 = arith.select %23, %20, %21 : vector<1x1x128xi1>, vector<1x1x128xf32>
    %cst_11 = arith.constant 9.99999997E-7 : f32
    %25 = vector.broadcast %cst_11 : f32 to vector<1x1x128xf32>
    %26 = arith.addf %24, %25 : vector<1x1x128xf32>
    %27 = math.rsqrt %26 : vector<1x1x128xf32>
    %cst_12 = arith.constant 1.000000e+00 : f32
    %28 = vector.broadcast %cst_12 : f32 to vector<1x1x128xf32>
    %29 = vector.shape_cast %6 : vector<1x1x1xi1> to vector<1x1x1xi1>
    %30 = vector.broadcast %29 : vector<1x1x1xi1> to vector<1x1x128xi1>
    %31 = arith.select %30, %27, %28 : vector<1x1x128xi1>, vector<1x1x128xf32>
    %c0_13 = arith.constant 0 : index
    %c0_14 = arith.constant 0 : index
    %32 = vector.load %arg4[%c0_13, %c0_14] : memref<1x128xf32, #tpu.memory_space<vmem>>, vector<1x128xf32>
    %33 = vector.shape_cast %32 : vector<1x128xf32> to vector<1x1x128xf32>
    %c0_15 = arith.constant 0 : index
    %c0_16 = arith.constant 0 : index
    %34 = vector.load %arg5[%c0_15, %c0_16] : memref<1x128xf32, #tpu.memory_space<vmem>>, vector<1x128xf32>
    %35 = vector.shape_cast %34 : vector<1x128xf32> to vector<1x1x128xf32>
    %36 = arith.mulf %31, %33 : vector<1x1x128xf32>
    %37 = arith.mulf %13, %36 : vector<1x1x128xf32>
    %38 = arith.subf %35, %37 : vector<1x1x128xf32>
    %39 = vector.broadcast %36 : vector<1x1x128xf32> to vector<1x8x128xf32>
    %40 = arith.mulf %3, %39 : vector<1x8x128xf32>
    %41 = vector.broadcast %38 : vector<1x1x128xf32> to vector<1x8x128xf32>
    %42 = arith.addf %40, %41 : vector<1x8x128xf32>
    %c0_17 = arith.constant 0 : index
    %c0_18 = arith.constant 0 : index
    %c0_19 = arith.constant 0 : index
    %43 = vector.load %arg6[%c0_17, %c0_18, %c0_19] : memref<1x8x128xf32, #tpu.memory_space<vmem>>, vector<1x8x128xf32>
    tpu.vector_store %arg6[%c0_17, %c0_18, %c0_19], %42 {strides = array<i32>} : memref<1x8x128xf32, #tpu.memory_space<vmem>>, vector<1x8x128xf32>,
    return
  }
  func.func @transform_0(%arg0: i32) -> (i32, i32, i32) {
    %c0_i32 = arith.constant 0 : i32
    %c0_i32_0 = arith.constant 0 : i32
    %c0_i32_1 = arith.constant 0 : i32
    return %arg0, %c0_i32, %c0_i32_0 : i32, i32, i32
  }
  func.func @transform_1(%arg0: i32) -> (i32, i32, i32) {
    %c0_i32 = arith.constant 0 : i32
    %c0_i32_0 = arith.constant 0 : i32
    %c0_i32_1 = arith.constant 0 : i32
    return %arg0, %c0_i32, %c0_i32_0 : i32, i32, i32
  }
  func.func @transform_2(%arg0: i32) -> (i32, i32, i32) {
    %c0_i32 = arith.constant 0 : i32
    %c0_i32_0 = arith.constant 0 : i32
    %c0_i32_1 = arith.constant 0 : i32
    return %arg0, %c0_i32, %c0_i32_0 : i32, i32, i32
  }
  func.func @transform_3(%arg0: i32) -> (i32, i32) {
    %c0_i32 = arith.constant 0 : i32
    %c0_i32_0 = arith.constant 0 : i32
    %c0_i32_1 = arith.constant 0 : i32
    return %c0_i32, %c0_i32_0 : i32, i32
  }
  func.func @transform_4(%arg0: i32) -> (i32, i32) {
    %c0_i32 = arith.constant 0 : i32
    %c0_i32_0 = arith.constant 0 : i32
    %c0_i32_1 = arith.constant 0 : i32
    return %c0_i32, %c0_i32_0 : i32, i32
  }
  func.func @transform_5(%arg0: i32) -> (i32, i32, i32) {
    %c0_i32 = arith.constant 0 : i32
    %c0_i32_0 = arith.constant 0 : i32
    %c0_i32_1 = arith.constant 0 : i32
    return %arg0, %c0_i32, %c0_i32_0 : i32, i32, i32
  }
}

</mosaic_0001>

<bundles_post_ra>
// kernel: tpu_custom_call.1
= control target key start
LH: loop header
LB: loop body
LE: loop exit
PB: predicated region body
PF: predicated region fallthrough
CT: control target
= control target key end

     0   :  { %10 = vsyncpa [#allocation3], 0  ;;  %s688_s0 = inlined_call_operand.vmem [shape: f32[2,1,1], index: 0, kind: input, shape index: {}]   ;;  %s689_s1 = inlined_call_operand.vmem [shape: f32[2,8,1], index: 1, kind: input, shape index: {}]   ;;  %s690_s2 = inlined_call_operand.vmem [shape: f32[2,8,128], index: 2, kind: input, shape index: {}]   ;;  %s691_s3 = inlined_call_operand.vmem [shape: f32[1,128], index: 3, kind: input, shape index: {}]   ;;  %s692_s4 = inlined_call_operand.vmem [shape: f32[1,128], index: 4, kind: input, shape index: {}]   ;;  %s693_s5 = inlined_call_operand.hbm [shape: f32[2,8,128], index: 5, kind: output, shape index: {}]  }
   0x1   :  { %12 = vsyncpa [#allocation3 + $0x1], 0  ;;  %s566_s18 = smov 0   ;;  %s568_s19 = smov 0  }
   0x2   :  { %s570_s20 = smov 0   ;;  %s572_s21 = smov 0  }
   0x3 LB: > { %s587_s22 = sadd.s32 4294967295, %s532_s21   ;;  %s413_s23 = sadd.s32 4294967294, %s532_s21   ;;  %s532_s21 = sphi %s572_s21, %s701_s21   ;;  %s528_s20 = sphi %s570_s20, %s700_s20   ;;  %s524_s19 = sphi %s568_s19, %s699_s19   ;;  %s520_s18 = sphi %s566_s18, %s698_s18  }
   0x4   : > { %s591_s24 = sadd.s32 1, %s532_s21   ;;  %s145_s25 = sadd.s32 1, %s528_s20 }
   0x5   : > { %s142_s26 = ssub.s32 %s532_s21, %s591_s24  ;;  %p155_p0 = scmp.ne.s32.totalorder %s528_s20, %s524_s19 }
   0x6   : > { %p143_p1 = scmp.eq.s32.totalorder %s142_s26, 0  ;;  %p156_p2 = scmp.eq.s32.totalorder %s587_s22, 1 }
   0x7   : > { %p161_p3 = scmp.ne.s32.totalorder %s524_s19, %s520_s18  ;;  %p162_p4 = scmp.eq.s32.totalorder %s413_s23, 1 }
   0x8   : > { %s602_s27 = scalar_select %p143_p1, %s528_s20, %s145_s25  }
   0x9   : > { %p604_p5 = por %p156_p2, %p155_p0  ;;  %p608_p6 = por %p162_p4, %p161_p3 }
   0xa   : > { %p416_p7 = scmp.ge.s32.totalorder %s532_s21, 1  ;;  %p206_p8 = scmp.lt.s32.totalorder %s532_s21, 3 }
   0xc   : > { %p207_p9 = pnand %p416_p7, %p206_p8 }
   0xd   : > { %p240_p10 = scmp.lt.s32.totalorder (!%p207_p9), %s587_s22, 1  ;;  %v534_v0 = vmov (!%p207_p9), 0   ;;  %v272_v4 = vlaneseq (!%p207_p9)  ;;  %s237_s16 = sand.u32 (!%p207_p9), 1, %s524_s19   ;;  %v301_v35 = vld [vmem:[%s691_s3] sm:$0x1] (!%p207_p9) }
   0xe   : > { %210 = sbr.rel (%p207_p9) target bundleno = 231 (0xe7), region = 40  ;;  %464 = vset.pattern.permute.xlu0 (!%p207_p9), %v534_v0  ;;  %465 = vset.pattern.permute.xlu1 (!%p207_p9), %v534_v0  ;;  %s417_s25 = sshll.u32 (!%p207_p9), %s237_s16, 3  ;;  %v302_v39 = vld [vmem:[%s692_s4] sm:$0x1] (!%p207_p9) }
   0xf   : > { %v273_v5 = vshrl.u32 (!%p207_p9), %v272_v4, 7  ;;  %s239_s7 = scalar_lea.vmem (!%p207_p9), [#allocation2], %s417_s25 }
  0x10   : > { %s333_s8 = sshll.u32 (!%p207_p9), %s239_s7, 4  ;;  %s648_s8 = int_to_ptr.vmem [resolvable:$true] %s333_s8 }
  0x11   : > { %v274_v9 = vsub.s32 (!%p207_p9), 0, %v273_v5  ;;  %s470_s13 = scalar_lea.vmem (!%p207_p9), %s648_s8, 128 }
  0x12   : > { %p471_p11 = scmp.ne.s32.totalorder (!%p207_p9), %s648_s8, %s470_s13 }
  0x14   : > { %p472_p12 = pnand (!%p207_p9), %p471_p11, %p604_p5 }
  0x15   : > { %s241_s30 = scalar_select %p240_p10, %s587_s22, 1 }
  0x16   : > { %p473_p13 = pneg %p472_p12 }
  0x17   : > { %s418_s6 = sshll.u32 %s241_s30, 3  ;;  %s242_s9 = scalar_lea.vmem %s688_s0, %s241_s30 }
  0x18   : > { %s246_s12 = scalar_lea.vmem %s689_s1, %s418_s6  ;;  %v259_v1 = vld [vmem:[%s242_s9] sm:$0x1]  ;;  %s250_s15 = scalar_lea.vmem %s690_s2, %s418_s6 }
  0x19   : > { %v251_v2 = vld [vmem:[%s246_s12] sm:$0xff]  ;;  %vm260_vm0 = vcmp.gt.f32.partialorder %v259_v1, 1.0  ;;  %s421_s6 = sshll.u32 %s587_s22, 7  ;;  %s320_s12 = scalar_lea.sflag [#allocation3], %s237_s16 }
  0x1a   : > { %255 = vperm.xlu0 %464, %v251_v2   ;;  %v278_v3 = vsel %vm260_vm0, 1, %v534_v0  ;;  %v252_v6 = vld [vmem:[%s250_s15] sm:$0xff]  ;;  %s646_s11 = scalar_lea.hbm %s693_s5, %s421_s6  ;;  %s535_s22 = smov [#allocation2]  }
  0x1b   : > { %280 = vperm.xlu1 %465, %v278_v3   ;;  %s474_s14 = sshll.u32 %s535_s22, 4  ;;  %s475_s14 = int_to_ptr.vmem [resolvable:$false] %s474_s14 }
  0x1c   : > { %s476_s15 = scalar_lea.vmem %s475_s14, 256  ;;  %p477_p0 = scmp.lt.s32.totalorder %s648_s8, %s475_s14 }
  0x1d   : > { %p478_p1 = scmp.lt.s32.totalorder %s476_s15, %s470_s13 }
  0x1e   : > { %269 = vperm.xlu0 %464, %v259_v1  }
  0x1f   : > { %p479_p2 = por %p478_p1, %p477_p0 }
  0x21   : > { %p480_p3 = pnand %p479_p2, %p473_p13 }
  0x99   : > { %v256_v7 = vpop.permute.xlu0 %255 }
  0x9a   : > { %v258_v8 = vmul.f32 %v256_v7, %v252_v6  ;;  %v281_v16 = vpop.permute.xlu1 %280 }
  0x9b   : > { %v285_v18 = vrot.slane %v281_v16, %v274_v9 }
  0x9c   : > { %v261_v10 = vrot.slane %v258_v8, 4 }
  0x9d   : > { %v270_v11 = vpop.permute.xlu0 %269  ;;  %vm625_vm1 = vcmp.eq.s32.totalorder %v285_v18, 1 }
  0x9e   : > { %v262_v12 = vadd.f32 %v261_v10, %v258_v8  ;;  %v275_v13 = vrot.slane %v270_v11, %v274_v9 }
  0xa0   : > { %v263_v14 = vrot.slane %v262_v12, 2  ;;  %466 = vrcp.f32 %v275_v13 }
  0xa2   : > { %v264_v15 = vadd.f32 %v263_v14, %v262_v12 }
  0xa4   : > { %v265_v17 = vrot.slane %v264_v15, 1 }
  0xa6   : > { %v266_v19 = vadd.f32 %v265_v17, %v264_v15 }
  0xaa   : > { %v467_v20 = vpop.eup %466 }
  0xab   : > { %v277_v22 = vmul.f32 %v467_v20, %v266_v19 }
  0xad   : > { %v287_v23 = vsel %vm625_vm1, %v277_v22, %v266_v19 }
  0xae   : > { %v288_v24 = vsub.f32 %v258_v8, %v287_v23 }
  0xb0   : > { %v289_v25 = vmul.f32 %v288_v24, %v288_v24 }
  0xb2   : > { %v290_v26 = vrot.slane %v289_v25, 4 }
  0xb4   : > { %v291_v27 = vadd.f32 %v290_v26, %v289_v25 }
  0xb6   : > { %v292_v28 = vrot.slane %v291_v27, 2 }
  0xb8   : > { %v293_v29 = vadd.f32 %v292_v28, %v291_v27 }
  0xba   : > { %v294_v30 = vrot.slane %v293_v29, 1 }
  0xbc   : > { %v295_v31 = vadd.f32 %v294_v30, %v293_v29 }
  0xbe   : > { %v296_v32 = vmul.f32 %v467_v20, %v295_v31 }
  0xc0   : > { %v297_v33 = vsel %vm625_vm1, %v296_v32, 0.0 }
  0xc1   : > { %v298_v34 = vadd.f32 1e-06, %v297_v33 }
  0xc3   : > { %468 = vrsqrt.f32 %v298_v34 }
  0xcd   : > { %v469_v36 = vpop.eup %468 }
  0xce   : > { %v300_v37 = vsel %vm625_vm1, %v469_v36, 1.0 }
  0xcf   : > { %v303_v38 = vmul.f32 %v301_v35, %v300_v37 }
  0xd1   : > { %v304_v40 = vmul.f32 %v303_v38, %v287_v23  ;;  %v309_v41 = vrot.slane %v303_v38, %v274_v9 }
  0xd3   : > { %v305_v42 = vsub.f32 %v302_v39, %v304_v40  ;;  %v310_v43 = vmul.f32 %v309_v41, %v258_v8 }
  0xd5   : > { %v315_v44 = vrot.slane %v305_v42, %v274_v9 }
  0xd7   : > { %v317_v45 = vadd.f32 %v315_v44, %v310_v43 }
  0xd9   : > { %318 = vst [vmem:[%s239_s7] sm:$0xff] %v317_v45 }
  0xda   : > { %483 = shalt.err (!%p480_p3)
}
  0xdb   : > { %s484_s16 = scalar_lea.hbm %s646_s11, 128  ;;  %s488_s25 = scalar_lea.hbm %s693_s5, 256 }
  0xdc   : > { %p485_p4 = scmp.ne.s32.totalorder %s646_s11, %s484_s16  ;;  %p489_p9 = scmp.lt.u32.totalorder %s646_s11, %s693_s5 }
  0xdd   : > { %p490_p10 = scmp.lt.u32.totalorder %s488_s25, %s484_s16  ;;  %p492_p12 = scmp.lt.u32.totalorder %s484_s16, %s646_s11 }
  0xde   : > { %p486_p7 = pnand %p485_p4, %p604_p5 }
  0xdf   : > { %p491_p11 = por %p490_p10, %p489_p9 }
  0xe0   : > { %p487_p8 = pneg %p486_p7 }
  0xe1   : > { %p493_p13 = por %p492_p12, %p491_p11 }
  0xe3   : > { %p494_p0 = pnand %p493_p13, %p487_p8 }
  0xe5   : > { %497 = shalt.err (!%p494_p0)
}
  0xe6   : > { %424 = dma.vmem_to_hbm [thread:$0]  (%p604_p5), %s648_s8, 128, %s646_s11, %s320_s12  }
  0xe7 PF: > { %p430_p1 = scmp.ge.s32.totalorder %s532_s21, 2  ;;  %s345_s6 = sand.u32 1, %s520_s18  }
  0xe8   : > { %s346_s7 = scalar_lea.sflag [#allocation3], %s345_s6 }
  0xe9   : > { %p427_p2 = pnand %p430_p1, %p608_p6 }
  0xeb   : > { %515 = dma.done.wait (!%p427_p2), %s346_s7, 128  }
  0xec   : > { %517 = vsyncadd (!%p427_p2), %s346_s7, 4294967168  ;;  %p15_p3 = scmp.ge.s32.totalorder %s591_s24, 4   ;;  %s698_s18 = smov %s524_s19 }
  0xed   : > { %s699_s19 = smov %s528_s20  ;;  %s700_s20 = smov %s602_s27 }
  0xee   : > { %s701_s21 = smov %s591_s24  ;;  %17 = sbr.rel (!%p15_p3) target bundleno = 3 (0x3), region = 81 }
  0xf5   :  { %351 = vsyncpa [#allocation3], 1 }
  0xf6   :  { %353 = vsyncpa [#allocation3 + $0x1], 1 }

</bundles_post_ra>
